<compile_context>
chip_gen: v7x
topology: tpu7x:2x2x1
jax: 0.10.0
libtpu: 0.0.40
codegen_flags: <defaults>
</compile_context>

<pallas_src>
import jax
import jax.numpy as jnp
import numpy as np
from jax.experimental import pallas as pl
from jax.experimental.pallas import tpu as pltpu


def _round_up(x, m):
    return ((x + m - 1) // m) * m


# ----------------------------------------------------------------------------
# Host-side weight prep: express Conv1d (incl. its zero padding and the input
# memory layout) as a dense (flat_in, L_out*C_out) matrix so the kernels are
# pure 2-D MXU matmuls with fully lane-dense outputs.
# ----------------------------------------------------------------------------
def _conv1d_as_matrix(w_ock, l_in, pad, *, input_layout):
    """w_ock: (C_out, C_in, K) PyTorch Conv1d weight.
    input_layout == "ncl": flat input index = c*L + p   (raw PyTorch layout, reshaped)
    input_layout == "nlc": flat input index = p*C_in + c (position-major, channel-minor)
    Returns (band, l_out) with band[flat_in, lo*C_out + o]."""
    w = np.asarray(w_ock, np.float32)
    c_out, c_in, k = w.shape
    l_out = l_in + 2 * pad - k + 1
    band = np.zeros((l_in * c_in, l_out * c_out), np.float32)
    for lo in range(l_out):
        for kk in range(k):
            p = lo + kk - pad
            if 0 <= p < l_in:                       # zero padding folded in here
                cols = slice(lo * c_out, (lo + 1) * c_out)
                if input_layout == "nlc":
                    band[p * c_in:(p + 1) * c_in, cols] = w[:, :, kk].T
                else:  # "ncl"
                    band[np.arange(c_in) * l_in + p, cols] = w[:, :, kk].T
    return band, l_out


# ----------------------------------------------------------------------------
# Kernel 1 (fused): network0 Conv1d+ReLU  ->  per-allele sum  ->  depth normalize
#   x_ref  : (TR, C_in*L)       bf16   read tile, NCL-flattened
#   w0_ref : (C_in*L, L0*C_h)   bf16   banded conv weight
#   b0_ref : (1, L0*C_h)        f32    bias tiled per position
#   aid_ref: (1, TR)            int32  allele id per read (out-of-range for padding)
#   inv_ref: (A_pad, 1)         f32    1/depthMultiplier (applied once at the end)
#   o_ref  : (A_pad, L0*C_h)    f32    resident accumulator across the read-tile grid
# ----------------------------------------------------------------------------
def _conv_segsum_kernel(x_ref, w0_ref, b0_ref, aid_ref, inv_ref, o_ref):
    @pl.when(pl.program_id(0) == 0)
    def _init():
        o_ref[...] = jnp.zeros_like(o_ref)

    # Conv1d + ReLU for the whole read tile as ONE MXU matmul; output is already
    # lane-dense (TR, L0*C_h), so no reshape / masked narrow store is needed.
    h = jnp.dot(x_ref[...], w0_ref[...], preferred_element_type=jnp.float32)
    frames = jnp.maximum(h + b0_ref[...], 0.0).astype(jnp.bfloat16)

    # One-hot segment tile built in-kernel from the per-read allele ids (O(R) HBM
    # instead of a dense O(A*R) seg array).  Padded reads carry an out-of-range id,
    # so their ReLU(bias) rows never reach any allele's sum.
    a_pad, tr = o_ref.shape[0], x_ref.shape[0]
    a_iota = jax.lax.broadcasted_iota(jnp.int32, (a_pad, tr), 0)
    seg = (aid_ref[...] == a_iota).astype(jnp.bfloat16)          # (A_pad, TR)

    o_ref[...] += jnp.dot(seg, frames, preferred_element_type=jnp.float32)

    @pl.when(pl.program_id(0) == pl.num_programs(0) - 1)
    def _finalize():
        o_ref[...] = o_ref[...] * inv_ref[...]


def conv_segsum(x2d, allele_id, w0_mat, b0_t, inv_depth, *, a_pad, tile_reads):
    r_pad, d_in = x2d.shape
    d_out = w0_mat.shape[1]
    assert r_pad % tile_reads == 0 and w0_mat.shape[0] == d_in
    # TODO(synk): for production read counts, size tile_reads from VMEM and set
    #             pltpu.CompilerParams(vmem_limit_bytes=...) explicitly.
    return pl.pallas_call(
        _conv_segsum_kernel,
        out_shape=jax.ShapeDtypeStruct((a_pad, d_out), jnp.float32),
        grid=(r_pad // tile_reads,),
        in_specs=[
            pl.BlockSpec((tile_reads, d_in), lambda i: (i, 0)),
            pl.BlockSpec((d_in, d_out), lambda i: (0, 0)),
            pl.BlockSpec((1, d_out), lambda i: (0, 0)),
            pl.BlockSpec((1, tile_reads), lambda i: (0, i)),
            pl.BlockSpec((a_pad, 1), lambda i: (0, 0)),
        ],
        out_specs=pl.BlockSpec((a_pad, d_out), lambda i: (0, 0)),
        compiler_params=pltpu.CompilerParams(dimension_semantics=("arbitrary",)),
    )(x2d, w0_mat, b0_t, allele_id, inv_depth)


# ----------------------------------------------------------------------------
# Kernel 2 (fused): GraphSearcher head = Conv1d+ReLU + mean-pool + Linear
#   x_ref : (TA, L0*C_h) bf16   w1_ref: (L0*C_h, L1*C2) bf16 banded conv weight
#   b1_ref: (1, L1*C2)   f32    wh_ref: (L1*C2, n_cls)  bf16 head weight tiled & /L1
#   bh_ref: (1, n_cls)   f32    o_ref : (TA, n_cls)     f32
# ----------------------------------------------------------------------------
def _graph_searcher_kernel(x_ref, w1_ref, b1_ref, wh_ref, bh_ref, o_ref):
    h = jnp.dot(x_ref[...], w1_ref[...], preferred_element_type=jnp.float32)
    h = jnp.maximum(h + b1_ref[...], 0.0).astype(jnp.bfloat16)       # (TA, L1*C2)
    # mean-pool over positions + Linear folded into one matmul (wh pre-tiled, /L1)
    o_ref[...] = (jnp.dot(h, wh_ref[...], preferred_element_type=jnp.float32)
                  + bh_ref[...])


def graph_searcher(x2d, l_in, w1_ock, b1, wh, bh, *, pad, tile_alleles):
    a_pad, d_in = x2d.shape
    c2, c_in1, k1 = w1_ock.shape
    n_cls = wh.shape[1]
    assert d_in == l_in * c_in1 and a_pad % tile_alleles == 0
    w1_mat, l_out = _conv1d_as_matrix(w1_ock, l_in, pad, input_layout="nlc")
    b1_t = np.tile(np.asarray(b1, np.float32), l_out).reshape(1, l_out * c2)
    wh_rep = np.tile(np.asarray(wh, np.float32) / float(l_out), (l_out, 1))
    return pl.pallas_call(
        _graph_searcher_kernel,
        out_shape=jax.ShapeDtypeStruct((a_pad, n_cls), jnp.float32),
        grid=(a_pad // tile_alleles,),
        in_specs=[
            pl.BlockSpec((tile_alleles, d_in), lambda i: (i, 0)),
            pl.BlockSpec((d_in, l_out * c2), lambda i: (0, 0)),
            pl.BlockSpec((1, l_out * c2), lambda i: (0, 0)),
            pl.BlockSpec((l_out * c2, n_cls), lambda i: (0, 0)),
            pl.BlockSpec((1, n_cls), lambda i: (0, 0)),
        ],
        out_specs=pl.BlockSpec((tile_alleles, n_cls), lambda i: (i, 0)),
        compiler_params=pltpu.CompilerParams(dimension_semantics=("parallel",)),
    )(x2d,
      jnp.asarray(w1_mat, jnp.bfloat16), jnp.asarray(b1_t, jnp.float32),
      jnp.asarray(wh_rep, jnp.bfloat16),
      jnp.asarray(np.asarray(bh, np.float32).reshape(1, n_cls)))


# ----------------------------------------------------------------------------
# ReadConvolverDNN.forward
# ----------------------------------------------------------------------------
def read_convolver_forward(params, tensors_ncl, num_alleles_per_site,
                           num_reads_per_allele, depth_multiplier=None,
                           multiplier_mode="normalize",
                           tile_reads=1024, tile_alleles=256):
    r, c_in, l = tensors_ncl.shape
    a = len(num_reads_per_allele)
    pad0 = pad1 = 1                              # Conv1d paddings of network0 / network1

    tile_reads = min(tile_reads, _round_up(max(r, 1), 128))
    tile_alleles = min(tile_alleles, _round_up(max(a, 1), 8))
    r_pad = _round_up(max(r, 1), tile_reads)
    a_pad = _round_up(max(a, 1), tile_alleles)

    # network0 conv as one GEMM on the NCL-flattened reads: the transpose and the conv
    # zero padding live in the weight matrix, so the only HBM pass over the reads is the
    # unavoidable f32->bf16 cast + read padding (one fused XLA copy).
    # (In production these banded weights would be precomputed once per model.)
    w0_mat, l0 = _conv1d_as_matrix(params["w0"], l, pad0, input_layout="ncl")
    c_h = params["w0"].shape[0]
    b0_t = np.tile(np.asarray(params["b0"], np.float32), l0).reshape(1, l0 * c_h)

    x2 = tensors_ncl.astype(jnp.bfloat16).reshape(r, c_in * l)
    x2 = jnp.pad(x2, ((0, r_pad - r), (0, 0)))

    # per-read allele id in torch.split order; padded reads get an out-of-range id
    nra = np.asarray(num_reads_per_allele, np.int64)
    aid = np.repeat(np.arange(a, dtype=np.int32), nra)
    aid = np.pad(aid, (0, r_pad - r), constant_values=np.int32(a_pad))
    allele_id = jnp.asarray(aid.reshape(1, r_pad))

    use_norm = depth_multiplier is not None and multiplier_mode == "normalize"
    if use_norm:
        # same semantics as torch division (depth == 0 still yields inf/nan)
        inv = (1.0 / depth_multiplier.astype(jnp.float32)).reshape(a, 1)
    else:
        inv = jnp.ones((a, 1), jnp.float32)
    inv = jnp.pad(inv, ((0, a_pad - a), (0, 0)), constant_values=1.0)

    # ---- fused network0 conv + ReLU + per-allele sum + normalization ----
    reduced2d = conv_segsum(x2, allele_id,
                            jnp.asarray(w0_mat, jnp.bfloat16),
                            jnp.asarray(b0_t, jnp.float32),
                            inv, a_pad=a_pad, tile_reads=tile_reads)   # (A_pad, L0*C_h)

    if depth_multiplier is not None and multiplier_mode != "normalize":
        # 'addendum' branch: prepend depthMultiplier as an extra leading channel
        # (== torch.cat((addendum, reducedFrames), dim=1)); requires a network1 conv
        # weight with C_h + 1 input channels.
        add = jnp.pad(depth_multiplier.astype(jnp.float32).reshape(a, 1),
                      ((0, a_pad - a), (0, 0)))
        add = jnp.broadcast_to(add[:, None, :], (a_pad, l0, 1))
        red3 = jnp.concatenate([add, reduced2d.reshape(a_pad, l0, c_h)], axis=-1)
        gs_in = red3.reshape(a_pad, l0 * (c_h + 1))
    else:
        gs_in = reduced2d

    # ---- fused network1 (GraphSearcher): conv + ReLU + mean-pool + linear ----
    scores = graph_searcher(gs_in.astype(jnp.bfloat16), l0,
                            params["w1"], params["b1"], params["wh"], params["bh"],
                            pad=pad1, tile_alleles=tile_alleles)        # (A_pad, n_cls)

    # single device->host transfer, then per-site split on the host
    scores = np.asarray(scores[:a])
    out, start = [], 0
    for n_alleles in num_alleles_per_site:
        out.append(scores[start:start + n_alleles])
        start += n_alleles
    return out


# ----------------------------------------------------------------------------
# Pure-numpy reference (float64) for a correctness sanity check.
# ----------------------------------------------------------------------------
def _reference_forward_np(params, tensors, num_reads_per_allele, depth_multiplier):
    x = np.asarray(tensors, np.float64)                       # (R, C_in, L)
    w0, b0 = np.asarray(params["w0"], np.float64), np.asarray(params["b0"], np.float64)
    w1, b1 = np.asarray(params["w1"], np.float64), np.asarray(params["b1"], np.float64)
    wh, bh = np.asarray(params["wh"], np.float64), np.asarray(params["bh"], np.float64)

    def conv1d_relu_np(inp, w, b, pad):
        n, _, length = inp.shape
        c_out, _, k = w.shape
        xp = np.pad(inp, ((0, 0), (0, 0), (pad, pad)))
        l_out = length + 2 * pad - k + 1
        out = np.zeros((n, c_out, l_out))
        for pos in range(l_out):
            out[:, :, pos] = np.einsum('nck,ock->no', xp[:, :, pos:pos + k], w)
        return np.maximum(out + b[None, :, None], 0.0)

    frames = conv1d_relu_np(x, w0, b0, pad=1)                 # (R, C_h, L)
    a = len(num_reads_per_allele)
    reduced = np.zeros((a,) + frames.shape[1:])
    start = 0
    for i, nr in enumerate(num_reads_per_allele):
        reduced[i] = frames[start:start + nr].sum(axis=0)
        start += nr
    reduced = reduced / np.asarray(depth_multiplier, np.float64)[:, None, None]
    h = conv1d_relu_np(reduced, w1, b1, pad=1)                # (A, C2, L)
    pooled = h.mean(axis=2)                                   # (A, C2)
    return pooled @ wh + bh[None, :]


if __name__ == "__main__":
    key = jax.random.PRNGKey(0)
    k_in, k_w0, k_b0, k_w1, k_b1, k_wh, k_bh = jax.random.split(key, 7)

    # small shapes consistent with the module's forward semantics
    R, C_IN, L = 24, 8, 16        # total reads, read-feature channels, read length
    C_H, K0 = 16, 3               # network0 conv width / kernel size
    C_2, K1 = 16, 3               # network1 conv width / kernel size
    N_CLS = 2                     # per-allele prediction size
    num_reads_per_allele = [4, 3, 2, 5, 4, 3, 3]   # sums to R
    num_alleles_per_site = [2, 3, 2]               # sums to len(num_reads_per_allele)
    assert sum(num_reads_per_allele) == R
    assert sum(num_alleles_per_site) == len(num_reads_per_allele)

    tensors = jax.random.normal(k_in, (R, C_IN, L), jnp.float32)        # PyTorch NCL layout
    depth_multiplier = jnp.asarray(num_reads_per_allele, jnp.float32)   # per-allele depth

    params = {
        # network0: Conv1d(C_IN, C_H, kernel=3, padding=1) + ReLU
        "w0": 0.1 * jax.random.normal(k_w0, (C_H, C_IN, K0), jnp.float32),
        "b0": 0.1 * jax.random.normal(k_b0, (C_H,), jnp.float32),
        # network1 conv stage: Conv1d(C_H, C_2, kernel=3, padding=1) + ReLU
        "w1": 0.1 * jax.random.normal(k_w1, (C_2, C_H, K1), jnp.float32),
        "b1": 0.1 * jax.random.normal(k_b1, (C_2,), jnp.float32),
        # network1 head: mean pool over L + Linear(C_2, N_CLS)
        "wh": 0.1 * jax.random.normal(k_wh, (C_2, N_CLS), jnp.float32),
        "bh": 0.1 * jax.random.normal(k_bh, (N_CLS,), jnp.float32),
    }

    preds = read_convolver_forward(
        params, tensors, num_alleles_per_site, num_reads_per_allele,
        depth_multiplier=depth_multiplier, multiplier_mode="normalize")

    preds = jax.block_until_ready(preds)
    assert len(preds) == len(num_alleles_per_site)
    assert all(p.shape == (n, N_CLS) for p, n in zip(preds, num_alleles_per_site))

    # numerical sanity check against the float64 numpy reference (bf16 MXU operands)
    got = np.concatenate([np.asarray(p) for p in preds], axis=0)
    ref = _reference_forward_np(params, tensors, num_reads_per_allele, depth_multiplier)
    assert np.allclose(got, ref, rtol=5e-2, atol=5e-2), \
        f"mismatch: max abs err {np.abs(got - ref).max()}"

    print("KERNEL_OK")
</pallas_src>

<mosaic_0001>
module attributes {stable_mosaic.version = 11 : i64} {
  func.func @_conv_segsum_kernel(%arg0: i32, %arg1: memref<128x128xbf16, #tpu.memory_space<vmem>>, %arg2: memref<128x256xbf16, #tpu.memory_space<vmem>>, %arg3: memref<1x256xf32, #tpu.memory_space<vmem>>, %arg4: memref<1x128xi32, #tpu.memory_space<vmem>>, %arg5: memref<8x1xf32, #tpu.memory_space<vmem>>, %arg6: memref<8x256xf32, #tpu.memory_space<vmem>>) attributes {dimension_semantics = [#tpu.dimension_semantics<arbitrary>], iteration_bounds = array<i64: 1>, scalar_prefetch = 0 : i64, scratch_operands = 0 : i64, tpu.core_type = #tpu.core_type<tc>, window_params = [{transform_indices = @transform_0, window_bounds = array<i64: 128, 128>}, {pipeline_mode = #tpu.pipeline_mode<synchronous>, transform_indices = @transform_1, window_bounds = array<i64: 128, 256>}, {pipeline_mode = #tpu.pipeline_mode<synchronous>, transform_indices = @transform_2, window_bounds = array<i64: 1, 256>}, {transform_indices = @transform_3, window_bounds = array<i64: 1, 128>}, {pipeline_mode = #tpu.pipeline_mode<synchronous>, transform_indices = @transform_4, window_bounds = array<i64: 8, 1>}, {pipeline_mode = #tpu.pipeline_mode<synchronous>, transform_indices = @transform_5, window_bounds = array<i64: 8, 256>}]} {
    %c0_i32 = arith.constant 0 : i32
    %0 = arith.cmpi eq, %arg0, %c0_i32 : i32
    %1 = arith.extui %0 : i1 to i32
    %c0_i32_0 = arith.constant 0 : i32
    %2 = arith.cmpi ne, %1, %c0_i32_0 : i32
    scf.if %2 {
      %cst_16 = arith.constant 0.000000e+00 : f32
      %26 = vector.broadcast %cst_16 : f32 to vector<8x256xf32>
      %c0_17 = arith.constant 0 : index
      %c0_18 = arith.constant 0 : index
      %27 = vector.load %arg6[%c0_17, %c0_18] : memref<8x256xf32, #tpu.memory_space<vmem>>, vector<8x256xf32>
      tpu.vector_store %arg6[%c0_17, %c0_18], %26 {strides = array<i32>} : memref<8x256xf32, #tpu.memory_space<vmem>>, vector<8x256xf32>,
    } else {
    }
    %c0 = arith.constant 0 : index
    %c0_1 = arith.constant 0 : index
    %3 = vector.load %arg1[%c0, %c0_1] : memref<128x128xbf16, #tpu.memory_space<vmem>>, vector<128x128xbf16>
    %c0_2 = arith.constant 0 : index
    %c0_3 = arith.constant 0 : index
    %4 = vector.load %arg2[%c0_2, %c0_3] : memref<128x256xbf16, #tpu.memory_space<vmem>>, vector<128x256xbf16>
    %cst = arith.constant dense<0.000000e+00> : vector<128x256xf32>
    %5 = tpu.matmul %3, %4, %cst {dimension_numbers = #tpu.dot_dimension_numbers<[1], [0], [0], [1], [0, 0, 1, 1], [], []>} : vector<128x128xbf16>, vector<128x256xbf16>, vector<128x256xf32> -> vector<128x256xf32>
    %c0_4 = arith.constant 0 : index
    %c0_5 = arith.constant 0 : index
    %6 = vector.load %arg3[%c0_4, %c0_5] : memref<1x256xf32, #tpu.memory_space<vmem>>, vector<1x256xf32>
    %7 = vector.broadcast %6 : vector<1x256xf32> to vector<128x256xf32>
    %8 = arith.addf %5, %7 : vector<128x256xf32>
    %cst_6 = arith.constant 0.000000e+00 : f32
    %9 = vector.broadcast %cst_6 : f32 to vector<128x256xf32>
    %10 = arith.maximumf %8, %9 : vector<128x256xf32>
    %11 = arith.truncf %10 : vector<128x256xf32> to vector<128x256xbf16>
    %12 = tpu.iota {dimensions = array<i32: 0>} : vector<8x128xi32>
    %c0_7 = arith.constant 0 : index
    %c0_8 = arith.constant 0 : index
    %13 = vector.load %arg4[%c0_7, %c0_8] : memref<1x128xi32, #tpu.memory_space<vmem>>, vector<1x128xi32>
    %14 = vector.broadcast %13 : vector<1x128xi32> to vector<8x128xi32>
    %15 = arith.cmpi eq, %14, %12 : vector<8x128xi32>
    %16 = arith.extui %15 : vector<8x128xi1> to vector<8x128xi32>
    %17 = arith.sitofp %16 : vector<8x128xi32> to vector<8x128xf32>
    %18 = arith.truncf %17 : vector<8x128xf32> to vector<8x128xbf16>
    %c0_9 = arith.constant 0 : index
    %c0_10 = arith.constant 0 : index
    %19 = vector.load %arg6[%c0_9, %c0_10] : memref<8x256xf32, #tpu.memory_space<vmem>>, vector<8x256xf32>
    %cst_11 = arith.constant dense<0.000000e+00> : vector<8x256xf32>
    %20 = tpu.matmul %18, %11, %cst_11 {dimension_numbers = #tpu.dot_dimension_numbers<[1], [0], [0], [1], [0, 0, 1, 1], [], []>} : vector<8x128xbf16>, vector<128x256xbf16>, vector<8x256xf32> -> vector<8x256xf32>
    %21 = arith.addf %19, %20 : vector<8x256xf32>
    %c0_12 = arith.constant 0 : index
    %c0_13 = arith.constant 0 : index
    %22 = vector.load %arg6[%c0_12, %c0_13] : memref<8x256xf32, #tpu.memory_space<vmem>>, vector<8x256xf32>
    tpu.vector_store %arg6[%c0_12, %c0_13], %21 {strides = array<i32>} : memref<8x256xf32, #tpu.memory_space<vmem>>, vector<8x256xf32>,
    %c0_i32_14 = arith.constant 0 : i32
    %23 = arith.cmpi eq, %arg0, %c0_i32_14 : i32
    %24 = arith.extui %23 : i1 to i32
    %c0_i32_15 = arith.constant 0 : i32
    %25 = arith.cmpi ne, %24, %c0_i32_15 : i32
    scf.if %25 {
      %c0_16 = arith.constant 0 : index
      %c0_17 = arith.constant 0 : index
      %26 = vector.load %arg6[%c0_16, %c0_17] : memref<8x256xf32, #tpu.memory_space<vmem>>, vector<8x256xf32>
      %c0_18 = arith.constant 0 : index
      %c0_19 = arith.constant 0 : index
      %27 = vector.load %arg5[%c0_18, %c0_19] : memref<8x1xf32, #tpu.memory_space<vmem>>, vector<8x1xf32>
      %28 = vector.broadcast %27 : vector<8x1xf32> to vector<8x256xf32>
      %29 = arith.mulf %26, %28 : vector<8x256xf32>
      %c0_20 = arith.constant 0 : index
      %c0_21 = arith.constant 0 : index
      %30 = vector.load %arg6[%c0_20, %c0_21] : memref<8x256xf32, #tpu.memory_space<vmem>>, vector<8x256xf32>
      tpu.vector_store %arg6[%c0_20, %c0_21], %29 {strides = array<i32>} : memref<8x256xf32, #tpu.memory_space<vmem>>, vector<8x256xf32>,
    } else {
    }
    return
  }
  func.func @transform_0(%arg0: i32) -> (i32, i32) {
    %c0_i32 = arith.constant 0 : i32
    %c0_i32_0 = arith.constant 0 : i32
    return %arg0, %c0_i32 : i32, i32
  }
  func.func @transform_1(%arg0: i32) -> (i32, i32) {
    %c0_i32 = arith.constant 0 : i32
    %c0_i32_0 = arith.constant 0 : i32
    %c0_i32_1 = arith.constant 0 : i32
    return %c0_i32, %c0_i32_0 : i32, i32
  }
  func.func @transform_2(%arg0: i32) -> (i32, i32) {
    %c0_i32 = arith.constant 0 : i32
    %c0_i32_0 = arith.constant 0 : i32
    %c0_i32_1 = arith.constant 0 : i32
    return %c0_i32, %c0_i32_0 : i32, i32
  }
  func.func @transform_3(%arg0: i32) -> (i32, i32) {
    %c0_i32 = arith.constant 0 : i32
    %c0_i32_0 = arith.constant 0 : i32
    return %c0_i32, %arg0 : i32, i32
  }
  func.func @transform_4(%arg0: i32) -> (i32, i32) {
    %c0_i32 = arith.constant 0 : i32
    %c0_i32_0 = arith.constant 0 : i32
    %c0_i32_1 = arith.constant 0 : i32
    return %c0_i32, %c0_i32_0 : i32, i32
  }
  func.func @transform_5(%arg0: i32) -> (i32, i32) {
    %c0_i32 = arith.constant 0 : i32
    %c0_i32_0 = arith.constant 0 : i32
    %c0_i32_1 = arith.constant 0 : i32
    return %c0_i32, %c0_i32_0 : i32, i32
  }
}

</mosaic_0001>

<bundles_post_ra>
// kernel: tpu_custom_call.1
= control target key start
LH: loop header
LB: loop body
LE: loop exit
PB: predicated region body
PF: predicated region fallthrough
CT: control target
= control target key end

     0   :  { %10 = vsyncpa [#allocation3], 0  ;;  %s746_s0 = inlined_call_operand.hbm [shape: bf16[128,128], index: 0, kind: input, shape index: {}]   ;;  %s747_s1 = inlined_call_operand.hbm [shape: bf16[128,256], index: 1, kind: input, shape index: {}]   ;;  %s748_s2 = inlined_call_operand.vmem [shape: f32[1,256], index: 2, kind: input, shape index: {}]   ;;  %s749_s3 = inlined_call_operand.vmem [shape: s32[1,128], index: 3, kind: input, shape index: {}]   ;;  %s750_s4 = inlined_call_operand.vmem [shape: f32[8,1], index: 4, kind: input, shape index: {}]   ;;  %s751_s5 = inlined_call_operand.hbm [shape: f32[8,256], index: 5, kind: output, shape index: {}]  }
   0x1   :  { %11 = vsyncpa [#allocation6], 0 }
   0x2   :  { %12 = vsyncpa [#allocation4], 0  ;;  %s621_s18 = smov [#allocation2]   ;;  %s549_s22 = scalar_lea.hbm %s746_s0, 1024 }
   0x3   :  { %s18_s19 = sshll.u32 %s621_s18, 4  ;;  %p550_p0 = scmp.ne.s32.totalorder %s746_s0, %s549_s22  ;;  %s19_s19 = int_to_ptr.vmem [resolvable:$true] %s18_s19 }
   0x4   :  { %p553_p1 = scmp.lt.u32.totalorder %s549_s22, %s746_s0 }
   0x6   :  { %p555_p2 = pnand %p553_p1, %p550_p0 }
   0x8   :  { %558 = shalt.err (!%p555_p2)
}
   0x9   :  { %s559_s27 = scalar_lea.vmem %s19_s19, 1024  ;;  %p564_p4 = scmp.lt.s32.totalorder %s19_s19, %s19_s19 }
   0xa   :  { %p560_p3 = scmp.ne.s32.totalorder %s19_s19, %s559_s27  ;;  %p565_p5 = scmp.lt.s32.totalorder %s559_s27, %s559_s27 }
   0xc   :  { %p566_p6 = por %p565_p5, %p564_p4 }
   0xe   :  { %p567_p7 = pnand %p566_p6, %p560_p3 }
  0x10   :  { %570 = shalt.err (!%p567_p7)
}
  0x11   :  { %s622_s28 = smov 64   ;;  %s623_s29 = smov 4  }
  0x12   :  { %24 = dma.hbm_to_vmem [thread:$0]  %s746_s0, 1024, %s19_s19, [#allocation3], %s622_s28, %s622_s28, %s623_s29  }
  0x13   :  { %s624_s7 = smov [#allocation5]   ;;  %s571_s11 = scalar_lea.hbm %s747_s1, 2048 }
  0x14   :  { %s30_s8 = sshll.u32 %s624_s7, 4  ;;  %p572_p8 = scmp.ne.s32.totalorder %s747_s1, %s571_s11  ;;  %s31_s8 = int_to_ptr.vmem [resolvable:$true] %s30_s8 }
  0x15   :  { %p575_p9 = scmp.lt.u32.totalorder %s571_s11, %s747_s1 }
  0x17   :  { %p577_p10 = pnand %p575_p9, %p572_p8 }
  0x19   :  { %580 = shalt.err (!%p577_p10)
}
  0x1a   :  { %s581_s16 = scalar_lea.vmem %s31_s8, 2048  ;;  %p586_p12 = scmp.lt.s32.totalorder %s31_s8, %s31_s8 }
  0x1b   :  { %p582_p11 = scmp.ne.s32.totalorder %s31_s8, %s581_s16  ;;  %p587_p13 = scmp.lt.s32.totalorder %s581_s16, %s581_s16 }
  0x1d   :  { %p588_p0 = por %p587_p13, %p586_p12 }
  0x1f   :  { %p589_p1 = pnand %p588_p0, %p582_p11 }
  0x21   :  { %592 = shalt.err (!%p589_p1)
}
  0x22   :  { %s625_s0 = smov 128   ;;  %s626_s17 = smov 8  }
  0x23   :  { %36 = dma.hbm_to_vmem [thread:$0]  %s747_s1, 2048, %s31_s8, [#allocation6], %s625_s0, %s625_s0, %s626_s17  }
  0x24   :  { %615 = dma.done.wait [#allocation3], 1024  }
  0x25   :  { %616 = vsyncadd [#allocation3], 4294966272 }
  0x26   :  { %617 = dma.done.wait [#allocation6], 2048  }
  0x27   :  { %618 = vsyncadd [#allocation6], 4294965248  ;;  %v627_v0 = vmov 0   ;;  %v517_v1 = vld [vmem:[#allocation5 + $0x4] ss:$8 sps:$4 sm:$0xff]   ;;  %v543_v19 = vld [vmem:[#allocation2 + $0x10] sm:$0xff]   ;;  %v90_v26 = vlaneseq }
  0x28   :  { %260 = vmatprep.mubr.bf16.mxu0 %v627_v0  ;;  %434 = vmatprep.mubr.bf16.mxu1 %v627_v0  ;;  %v519_v2 = vld [vmem:[#allocation5] ss:$8 sps:$4 sm:$0xff]   ;;  %v520_v3 = vld [vmem:[#allocation5 + $0x14] ss:$8 sps:$4 sm:$0xff]   ;;  %v522_v4 = vld [vmem:[#allocation5 + $0x10] ss:$8 sps:$4 sm:$0xff]  }
  0x29   :  { %516 = vset.pattern.permute.xlu0 %v627_v0  ;;  %228 = vmatprep.subr.bf16.mxu0 %v517_v1  ;;  %v523_v5 = vld [vmem:[#allocation5 + $0x24] ss:$8 sps:$4 sm:$0xff]   ;;  %v525_v6 = vld [vmem:[#allocation5 + $0x20] ss:$8 sps:$4 sm:$0xff]   ;;  %v526_v7 = vld [vmem:[#allocation5 + $0x34] ss:$8 sps:$4 sm:$0xff]  }
  0x2a   :  { %229 = vmatpush1.bf16.msra.mxu0 %v519_v2  ;;  %v528_v8 = vld [vmem:[#allocation5 + $0x30] ss:$8 sps:$4 sm:$0xff]   ;;  %v529_v9 = vld [vmem:[#allocation5 + $0x44] ss:$8 sps:$4 sm:$0xff]   ;;  %v531_v10 = vld [vmem:[#allocation5 + $0x40] ss:$8 sps:$4 sm:$0xff]  }
  0x2b   :  { %230 = vmatprep.subr.bf16.mxu0 %v520_v3  ;;  %v532_v11 = vld [vmem:[#allocation5 + $0x54] ss:$8 sps:$4 sm:$0xff]   ;;  %v534_v12 = vld [vmem:[#allocation5 + $0x50] ss:$8 sps:$4 sm:$0xff]   ;;  %v535_v13 = vld [vmem:[#allocation5 + $0x64] ss:$8 sps:$4 sm:$0xff]  }
  0x2c   :  { %v537_v14 = vld [vmem:[#allocation5 + $0x60] ss:$8 sps:$4 sm:$0xff]   ;;  %v538_v15 = vld [vmem:[#allocation5 + $0x74] ss:$8 sps:$4 sm:$0xff]   ;;  %v540_v16 = vld [vmem:[#allocation5 + $0x70] ss:$8 sps:$4 sm:$0xff]  }
  0x2d   :  { %v541_v17 = vld [vmem:[#allocation2] sm:$0xff]   ;;  %v542_v18 = vld [vmem:[#allocation2 + $0x8] sm:$0xff]   ;;  %v544_v20 = vld [vmem:[#allocation2 + $0x18] sm:$0xff]   ;;  %v687_v27 = vshrl.u32 %v90_v26, 7  ;;  %s629_s23 = smov [#allocation7]  }
  0x2e   :  { %231 = vmatpush1.bf16.msra.mxu0 %v522_v4  ;;  %v545_v21 = vld [vmem:[#allocation2 + $0x20] sm:$0xff]   ;;  %v546_v22 = vld [vmem:[#allocation2 + $0x28] sm:$0xff]   ;;  %v547_v23 = vld [vmem:[#allocation2 + $0x30] sm:$0xff]   ;;  %s468_s24 = sshll.u32 %s629_s23, 4  ;;  %s469_s24 = int_to_ptr.vmem [resolvable:$true] %s468_s24 }
  0x2f   :  { %232 = vmatprep.subr.bf16.mxu0 %v523_v5  ;;  %v548_v24 = vld [vmem:[#allocation2 + $0x38] sm:$0xff]   ;;  %v452_v25 = vld [vmem:[%s750_s4] sm:$0xff]  ;;  %v92_v28 = vsub.s32 0, %v687_v27  ;;  %v96_v30 = vsub.s32 1, %v687_v27  ;;  %p598_p3 = scmp.lt.s32.totalorder %s469_s24, %s469_s24 }
  0x30   :  { %455 = vperm.xlu0 %516, %v452_v25   ;;  %v88_v29 = vld [vmem:[%s748_s2] sm:$0x3] }
  0x31   :  { %v694_v31 = vrot.slane %v88_v29, %v92_v28  ;;  %v696_v32 = vrot.slane %v88_v29, %v96_v30 }
  0x32   :  { %233 = vmatpush1.bf16.msra.mxu0 %v525_v6 }
  0x33   :  { %234 = vmatprep.subr.bf16.mxu0 %v526_v7 }
  0x36   :  { %235 = vmatpush1.bf16.msra.mxu0 %v528_v8 }
  0x37   :  { %236 = vmatprep.subr.bf16.mxu0 %v529_v9 }
  0x3a   :  { %237 = vmatpush1.bf16.msra.mxu0 %v531_v10 }
  0x3b   :  { %238 = vmatprep.subr.bf16.mxu0 %v532_v11 }
  0x3e   :  { %239 = vmatpush1.bf16.msra.mxu0 %v534_v12 }
  0x3f   :  { %240 = vmatprep.subr.bf16.mxu0 %v535_v13 }
  0x42   :  { %241 = vmatpush1.bf16.msra.mxu0 %v537_v14 }
  0x43   :  { %242 = vmatprep.subr.bf16.mxu0 %v538_v15 }
  0x46   :  { %243 = vmatpush1.bf16.msra.mxu0 %v540_v16 }
  0x49   :  { %261 = vmatmul.mubr.bf16.vlgmr.msra.gmra.mrb[0].mxu0 %v541_v17 }
  0x4a   :  { %270 = vmatprep.mubr.bf16.mxu0 %v627_v0 }
  0x51   :  { %271 = vmatmul.mubr.bf16.gmra.mrb[4].mxu0 %v542_v18 }
  0x52   :  { %280 = vmatprep.mubr.bf16.mxu0 %v627_v0 }
  0x59   :  { %281 = vmatmul.mubr.bf16.gmra.mrb[8].mxu0 %v543_v19 }
  0x5a   :  { %290 = vmatprep.mubr.bf16.mxu0 %v627_v0 }
  0x61   :  { %291 = vmatmul.mubr.bf16.gmra.mrb[12].mxu0 %v544_v20 }
  0x62   :  { %300 = vmatprep.mubr.bf16.mxu0 %v627_v0 }
  0x69   :  { %301 = vmatmul.mubr.bf16.gmra.mrb[16].mxu0 %v545_v21 }
  0x6a   :  { %310 = vmatprep.mubr.bf16.mxu0 %v627_v0 }
  0x71   :  { %311 = vmatmul.mubr.bf16.gmra.mrb[20].mxu0 %v546_v22 }
  0x72   :  { %320 = vmatprep.mubr.bf16.mxu0 %v627_v0 }
  0x79   :  { %321 = vmatmul.mubr.bf16.gmra.mrb[24].mxu0 %v547_v23 }
  0x7a   :  { %330 = vmatprep.mubr.bf16.mxu0 %v627_v0 }
  0x81   :  { %331 = vmatmul.mubr.bf16.gmra.mrb[28].mxu0 %v548_v24 }
 0x11c   :  { %v262_v33 = vpop.f32.mrb[0].mxu0 }
 0x11d   :  { %v263_v34 = vadd.f32 %v262_v33, %v694_v31  ;;  %v264_v35 = vpop.f32.mrb[1].mxu0 }
 0x11e   :  { %v265_v36 = vadd.f32 %v264_v35, %v696_v32  ;;  %v266_v37 = vpop.f32.mrb[2].mxu0 }
 0x11f   :  { %v267_v38 = vadd.f32 %v266_v37, %v694_v31  ;;  %v268_v39 = vpop.f32.mrb[3].mxu0  ;;  %v341_v41 = vmax.f32 %v263_v34, 0.0 }
 0x120   :  { %v269_v40 = vadd.f32 %v268_v39, %v696_v32  ;;  %v342_v43 = vmax.f32 %v265_v36, 0.0 }
 0x121   :  { %v343_v42 = vmax.f32 %v267_v38, 0.0 }
 0x122   :  { %v344_v44 = vmax.f32 %v269_v40, 0.0 }
 0x123   :  { %v373_v45 = vpack.c.bf16 %v343_v42, %v341_v41 }
 0x124   :  { %v272_v46 = vpop.f32.mrb[4].mxu0  ;;  %v374_v47 = vpack.c.bf16 %v344_v44, %v342_v43 }
 0x125   :  { %v273_v48 = vadd.f32 %v272_v46, %v694_v31  ;;  %v274_v49 = vpop.f32.mrb[5].mxu0 }
 0x126   :  { %v275_v50 = vadd.f32 %v274_v49, %v696_v32  ;;  %v276_v51 = vpop.f32.mrb[6].mxu0  ;;  %402 = vmatprep.subr.bf16.mxu1 %v374_v47 }
 0x127   :  { %v277_v52 = vadd.f32 %v276_v51, %v694_v31  ;;  %v278_v53 = vpop.f32.mrb[7].mxu0  ;;  %403 = vmatpush1.bf16.msra.mxu1 %v373_v45  ;;  %v345_v55 = vmax.f32 %v273_v48, 0.0 }
 0x128   :  { %v279_v54 = vadd.f32 %v278_v53, %v696_v32  ;;  %v346_v57 = vmax.f32 %v275_v50, 0.0 }
 0x129   :  { %v347_v56 = vmax.f32 %v277_v52, 0.0 }
 0x12a   :  { %v348_v58 = vmax.f32 %v279_v54, 0.0 }
 0x12b   :  { %v375_v59 = vpack.c.bf16 %v347_v56, %v345_v55 }
 0x12c   :  { %v376_v60 = vpack.c.bf16 %v348_v58, %v346_v57  ;;  %v282_v61 = vpop.f32.mrb[8].mxu0 }
 0x12d   :  { %v283_v62 = vadd.f32 %v282_v61, %v694_v31  ;;  %v284_v63 = vpop.f32.mrb[9].mxu0 }
 0x12e   :  { %v285_v0 = vadd.f32 %v284_v63, %v696_v32  ;;  %v286_v1 = vpop.f32.mrb[10].mxu0  ;;  %404 = vmatprep.subr.bf16.mxu1 %v376_v60 }
 0x12f   :  { %v287_v2 = vadd.f32 %v286_v1, %v694_v31  ;;  %v288_v3 = vpop.f32.mrb[11].mxu0  ;;  %405 = vmatpush1.bf16.msra.mxu1 %v375_v59  ;;  %v349_v5 = vmax.f32 %v283_v62, 0.0 }
 0x130   :  { %v289_v4 = vadd.f32 %v288_v3, %v696_v32  ;;  %v350_v7 = vmax.f32 %v285_v0, 0.0 }
 0x131   :  { %v351_v6 = vmax.f32 %v287_v2, 0.0 }
 0x132   :  { %v352_v8 = vmax.f32 %v289_v4, 0.0 }
 0x133   :  { %v377_v9 = vpack.c.bf16 %v351_v6, %v349_v5 }
 0x134   :  { %v378_v10 = vpack.c.bf16 %v352_v8, %v350_v7  ;;  %v292_v11 = vpop.f32.mrb[12].mxu0 }
 0x135   :  { %v293_v12 = vadd.f32 %v292_v11, %v694_v31  ;;  %v294_v13 = vpop.f32.mrb[13].mxu0 }
 0x136   :  { %v295_v14 = vadd.f32 %v294_v13, %v696_v32  ;;  %v296_v15 = vpop.f32.mrb[14].mxu0  ;;  %406 = vmatprep.subr.bf16.mxu1 %v378_v10 }
 0x137   :  { %v297_v16 = vadd.f32 %v296_v15, %v694_v31  ;;  %v298_v17 = vpop.f32.mrb[15].mxu0  ;;  %407 = vmatpush1.bf16.msra.mxu1 %v377_v9  ;;  %v353_v19 = vmax.f32 %v293_v12, 0.0 }
 0x138   :  { %v299_v18 = vadd.f32 %v298_v17, %v696_v32  ;;  %v354_v21 = vmax.f32 %v295_v14, 0.0 }
 0x139   :  { %v355_v20 = vmax.f32 %v297_v16, 0.0  ;;  %v502_v16 = vld [vmem:[%s749_s3] ss:$0 sm:$0xff]  ;;  %s593_s3 = scalar_lea.vmem %s469_s24, 256 }
 0x13a   :  { %v356_v22 = vmax.f32 %v299_v18, 0.0  ;;  %vm396_vm0 = vcmp.eq.s32.totalorder %v502_v16, %v687_v27  ;;  %p594_p2 = scmp.ne.s32.totalorder %s469_s24, %s593_s3  ;;  %p599_p4 = scmp.lt.s32.totalorder %s593_s3, %s593_s3 }
 0x13b   :  { %v379_v23 = vpack.c.bf16 %v355_v20, %v353_v19  ;;  %vm504_vm1 = vmpackc.low %vm396_vm0, %vm396_vm0 }
 0x13c   :  { %v380_v24 = vpack.c.bf16 %v356_v22, %v354_v21  ;;  %v302_v25 = vpop.f32.mrb[16].mxu0  ;;  %v456_v22 = vpop.permute.xlu0 %455  ;;  %p600_p5 = por %p599_p4, %p598_p3 }
 0x13d   :  { %v303_v26 = vadd.f32 %v302_v25, %v694_v31  ;;  %v304_v28 = vpop.f32.mrb[17].mxu0 }
 0x13e   :  { %v305_v29 = vadd.f32 %v304_v28, %v696_v32  ;;  %v306_v30 = vpop.f32.mrb[18].mxu0  ;;  %408 = vmatprep.subr.bf16.mxu1 %v380_v24  ;;  %p601_p6 = pnand %p600_p5, %p594_p2 }
 0x13f   :  { %v307_v33 = vadd.f32 %v306_v30, %v694_v31  ;;  %v308_v34 = vpop.f32.mrb[19].mxu0  ;;  %409 = vmatpush1.bf16.msra.mxu1 %v379_v23  ;;  %v357_v36 = vmax.f32 %v303_v26, 0.0 }
 0x140   :  { %v309_v35 = vadd.f32 %v308_v34, %v696_v32  ;;  %v358_v38 = vmax.f32 %v305_v29, 0.0 }
 0x141   :  { %v359_v37 = vmax.f32 %v307_v33, 0.0 }
 0x142   :  { %v360_v39 = vmax.f32 %v309_v35, 0.0 }
 0x143   :  { %v381_v40 = vpack.c.bf16 %v359_v37, %v357_v36 }
 0x144   :  { %v382_v41 = vpack.c.bf16 %v360_v39, %v358_v38  ;;  %v312_v42 = vpop.f32.mrb[20].mxu0 }
 0x145   :  { %v313_v43 = vadd.f32 %v312_v42, %v694_v31  ;;  %v314_v44 = vpop.f32.mrb[21].mxu0 }
 0x146   :  { %v315_v45 = vadd.f32 %v314_v44, %v696_v32  ;;  %v316_v46 = vpop.f32.mrb[22].mxu0  ;;  %410 = vmatprep.subr.bf16.mxu1 %v382_v41 }
 0x147   :  { %v317_v47 = vadd.f32 %v316_v46, %v694_v31  ;;  %v318_v48 = vpop.f32.mrb[23].mxu0  ;;  %411 = vmatpush1.bf16.msra.mxu1 %v381_v40  ;;  %v361_v50 = vmax.f32 %v313_v43, 0.0 }
 0x148   :  { %v319_v49 = vadd.f32 %v318_v48, %v696_v32  ;;  %v362_v52 = vmax.f32 %v315_v45, 0.0 }
 0x149   :  { %v363_v51 = vmax.f32 %v317_v47, 0.0 }
 0x14a   :  { %v364_v53 = vmax.f32 %v319_v49, 0.0 }
 0x14b   :  { %v383_v54 = vpack.c.bf16 %v363_v51, %v361_v50 }
 0x14c   :  { %v384_v55 = vpack.c.bf16 %v364_v53, %v362_v52  ;;  %v322_v56 = vpop.f32.mrb[24].mxu0 }
 0x14d   :  { %v323_v57 = vadd.f32 %v322_v56, %v694_v31  ;;  %v324_v58 = vpop.f32.mrb[25].mxu0 }
 0x14e   :  { %v325_v59 = vadd.f32 %v324_v58, %v696_v32  ;;  %v326_v60 = vpop.f32.mrb[26].mxu0  ;;  %412 = vmatprep.subr.bf16.mxu1 %v384_v55 }
 0x14f   :  { %v327_v61 = vadd.f32 %v326_v60, %v694_v31  ;;  %v328_v62 = vpop.f32.mrb[27].mxu0  ;;  %413 = vmatpush1.bf16.msra.mxu1 %v383_v54  ;;  %v365_v0 = vmax.f32 %v323_v57, 0.0 }
 0x150   :  { %v329_v63 = vadd.f32 %v328_v62, %v696_v32  ;;  %v366_v2 = vmax.f32 %v325_v59, 0.0 }
 0x151   :  { %v367_v1 = vmax.f32 %v327_v61, 0.0 }
 0x152   :  { %v368_v3 = vmax.f32 %v329_v63, 0.0 }
 0x153   :  { %v385_v4 = vpack.c.bf16 %v367_v1, %v365_v0 }
 0x154   :  { %v386_v5 = vpack.c.bf16 %v368_v3, %v366_v2  ;;  %v332_v6 = vpop.f32.mrb[28].mxu0 }
 0x155   :  { %v333_v7 = vadd.f32 %v332_v6, %v694_v31  ;;  %v334_v8 = vpop.f32.mrb[29].mxu0 }
 0x156   :  { %v335_v9 = vadd.f32 %v334_v8, %v696_v32  ;;  %v336_v10 = vpop.f32.mrb[30].mxu0  ;;  %414 = vmatprep.subr.bf16.mxu1 %v386_v5 }
 0x157   :  { %v337_v11 = vadd.f32 %v336_v10, %v694_v31  ;;  %v338_v12 = vpop.f32.mrb[31].mxu0  ;;  %415 = vmatpush1.bf16.msra.mxu1 %v385_v4  ;;  %v369_v14 = vmax.f32 %v333_v7, 0.0  ;;  %v628_v31 = vmov 1.0|1.0  }
 0x158   :  { %v339_v13 = vadd.f32 %v338_v12, %v696_v32  ;;  %v370_v17 = vmax.f32 %v335_v9, 0.0 }
 0x159   :  { %v371_v15 = vmax.f32 %v337_v11, 0.0 }
 0x15a   :  { %v372_v18 = vmax.f32 %v339_v13, 0.0 }
 0x15b   :  { %v387_v19 = vpack.c.bf16 %v371_v15, %v369_v14 }
 0x15c   :  { %v388_v20 = vpack.c.bf16 %v372_v18, %v370_v17 }
 0x15e   :  { %416 = vmatprep.subr.bf16.mxu1 %v388_v20 }
 0x15f   :  { %417 = vmatpush1.bf16.msra.mxu1 %v387_v19 }
 0x162   :  { %505 = vmatmul.mubr.msk.bf16.vlgmr.msra.gmra.mrb[0].mxu1 %vm504_vm1, %v628_v31 }
 0x235   :  { %v436_v21 = vpop.f32.mrb[0].mxu1 }
 0x236   :  { %v438_v32 = vpop.f32.mrb[1].mxu1  ;;  %v458_v25 = vmul.f32 %v456_v22, %v436_v21 }
 0x237   :  { %v440_v23 = vpop.f32.mrb[2].mxu1  ;;  %v459_v26 = vmul.f32 %v456_v22, %v438_v32 }
 0x238   :  { %v441_v24 = vpop.f32.mrb[3].mxu1  ;;  %460 = vst [vmem:[#allocation7] sm:$0xff] %v458_v25 }
 0x239   :  { %461 = vst [vmem:[#allocation7 + $0x8] sm:$0xff] %v459_v26 }
 0x23a   :  { %604 = shalt.err (!%p601_p6)
}
 0x23b   :  { %s605_s27 = scalar_lea.hbm %s751_s5, 256 }
 0x23c   :  { %p606_p7 = scmp.ne.s32.totalorder %s751_s5, %s605_s27  ;;  %p609_p8 = scmp.lt.u32.totalorder %s605_s27, %s751_s5 }
 0x23e   :  { %p611_p9 = pnand %p609_p8, %p606_p7 }
 0x240   :  { %614 = shalt.err (!%p611_p9)
}
 0x241   :  { %471 = dma.vmem_to_hbm [thread:$0]  %s469_s24, 256, %s751_s5, [#allocation4]  }
 0x242   :  { %619 = dma.done.wait [#allocation4], 256  }
 0x243   :  { %620 = vsyncadd [#allocation4], 4294967040 }
 0x244   :  { %475 = vsyncpa [#allocation3], 1 }
 0x245   :  { %476 = vsyncpa [#allocation6], 1 }
 0x246   :  { %477 = vsyncpa [#allocation4], 1 }

</bundles_post_ra>
